<compile_context>
chip_gen: v7x
topology: tpu7x:2x2x1
jax: 0.10.0
libtpu: 0.0.40
codegen_flags: <defaults>
</compile_context>

<pallas_src>
import math
from functools import partial

import jax
import jax.numpy as jnp
from jax.experimental import pallas as pl
from jax.experimental.pallas import tpu as pltpu


# -----------------------------------------------------------------------------
# Kernel body: one [tile_rows, lane_in] @ [lane_in, tile_n] MXU matmul + bias.
# -----------------------------------------------------------------------------
def _token_embed_kernel(x_ref, w_ref, b_ref, o_ref):
    acc = jnp.dot(x_ref[...], w_ref[...], preferred_element_type=jnp.float32)
    o_ref[...] = (acc + b_ref[...].astype(jnp.float32)).astype(o_ref.dtype)


def _round_up(a, b):
    return ((a + b - 1) // b) * b


def _lcm(a, b):
    return a * b // math.gcd(a, b)


def _sublane(dtype):
    # Second-minor tiling granule: 8 rows (f32), 16 (bf16), 32 (int8/fp8).
    return 32 // jnp.dtype(dtype).itemsize


def pick_group(batch, num_tokens, d_model, *, input_dim=None, max_group=8,
               max_weight_bytes=4 * 1024 * 1024, itemsize=4):
    """Group `g` whole batch rows per matmul row so the output lane width
    g*num_tokens*d_model is a multiple of 128 (unmasked vst). Only group when it
    is free: batch divisible by g (pure reshape) and the block-diagonal weight
    blow-up (g^2) stays small."""
    n_out = num_tokens * d_model
    g = _lcm(n_out, 128) // n_out
    if g == 1:
        return 1
    if g > max_group or batch % g != 0:
        return 1
    if input_dim is not None and (g * input_dim) * (g * n_out) * itemsize > max_weight_bytes:
        return 1
    return g


def prepare_feature_tokenizer(weight, bias, *, input_dim, token_dim, d_model,
                              group=1, param_dtype=None):
    """Init-time parameter prep (hoisted out of the per-forward path).

    Folds (a) the zero-padding of the ragged last token and (b) the per-token
    Linear into one block-diagonal weight, so the forward is a single matmul
    with no runtime pad / reshape-copy of x.

    weight: [token_dim, d_model] (transposed w.r.t. torch Linear's [out, in])
    bias:   [d_model]
    Returns (w_g [group*input_dim, group*num_tokens*d_model],
             b_g [1,               group*num_tokens*d_model]).
    """
    num_tokens = -(-input_dim // token_dim)
    # Token t reads input cols [t*token_dim:(t+1)*token_dim] and writes output
    # cols [t*d_model:(t+1)*d_model].
    w_bd = jnp.kron(jnp.eye(num_tokens, dtype=weight.dtype), weight)
    # Dropping the rows past input_dim is exactly the zero-padding of x's tail
    # (padded tail tokens become bias-only rows, as in the PyTorch forward).
    w_eff = w_bd[:input_dim, :]
    b_eff = jnp.tile(bias, num_tokens)
    if group > 1:
        w_eff = jnp.kron(jnp.eye(group, dtype=w_eff.dtype), w_eff)
        b_eff = jnp.tile(b_eff, group)
    if param_dtype is not None:  # e.g. jnp.bfloat16 on v5e (keeps MXU at full rate)
        w_eff = w_eff.astype(param_dtype)
        b_eff = b_eff.astype(param_dtype)
    return w_eff, b_eff.reshape(1, -1)


def feature_tokenizer_apply(x, w_g, b_g, *, num_tokens, d_model, group=1,
                            out_dtype=None,
                            vmem_budget_bytes=40 * 1024 * 1024,
                            vmem_limit_bytes=48 * 1024 * 1024):
    """Forward pass.  x: [batch, input_dim] -> [batch, num_tokens, d_model]."""
    batch, input_dim = x.shape
    out_dtype = jnp.dtype(x.dtype if out_dtype is None else out_dtype)

    lane_in, lane_out = w_g.shape
    assert lane_in == group * input_dim
    assert lane_out == group * num_tokens * d_model
    if batch % group != 0:
        raise ValueError("batch must be divisible by group (use pick_group)")

    rows = batch // group
    x_g = x.reshape(rows, lane_in)          # metadata-only reshape, no HBM copy

    it_in = jnp.dtype(x.dtype).itemsize
    it_w = jnp.dtype(w_g.dtype).itemsize
    it_out = out_dtype.itemsize
    sub = max(_sublane(x.dtype), _sublane(out_dtype))

    # ---- column (lane) tiling: keep the whole width VMEM-resident if it fits.
    w_budget = vmem_budget_bytes // 3
    if lane_in * lane_out * it_w <= w_budget:
        tile_n, grid_j, w_buffers = lane_out, 1, 1      # resident, single-buffered
    else:
        # TODO(synk): for very large num_tokens a per-token-tile kernel (streaming
        # only the nonzero weight blocks) would avoid the zero-block FLOPs here.
        tile_n = max(128, (w_budget // (2 * lane_in * it_w)) // 128 * 128)
        tile_n = min(tile_n, _round_up(lane_out, 128))
        grid_j, w_buffers = -(-lane_out // tile_n), 2

    # ---- row (sublane) tiling from the VMEM budget ---------------------------
    resident = lane_in * tile_n * it_w * w_buffers + tile_n * it_w * 2
    per_row = 2 * (lane_in * it_in + tile_n * it_out)   # double-buffered x / out
    rows_budget = max(sub, ((vmem_budget_bytes - resident) // per_row) // sub * sub)

    if rows <= sub:
        tile_rows = rows                                 # full-dim block
    else:
        min_steps = 2 if rows >= 2 * sub else 1          # feed both v7x TCs
        steps = max(min_steps, -(-rows // rows_budget))  # balanced tiles
        tile_rows = min(_round_up(-(-rows // steps), sub), rows_budget)
        if tile_rows >= rows:
            tile_rows = rows
    grid_i = -(-rows // tile_rows)                       # partial last block OK

    # ---- BlockSpecs -----------------------------------------------------------
    x_spec = pl.BlockSpec((tile_rows, lane_in), lambda i, j: (i, 0))
    if grid_j == 1:
        # Constant-index operands: don't waste VMEM on a second buffer.
        w_spec = pl.BlockSpec((lane_in, tile_n), lambda i, j: (0, j),
                              pipeline_mode=pl.Buffered(1))
        b_spec = pl.BlockSpec((1, tile_n), lambda i, j: (0, j),
                              pipeline_mode=pl.Buffered(1))
    else:
        w_spec = pl.BlockSpec((lane_in, tile_n), lambda i, j: (0, j))
        b_spec = pl.BlockSpec((1, tile_n), lambda i, j: (0, j))
    o_spec = pl.BlockSpec((tile_rows, tile_n), lambda i, j: (i, j))

    cost = pl.CostEstimate(
        flops=2 * rows * lane_in * lane_out,   # dense FLOPs actually issued on MXU
        transcendentals=0,
        bytes_accessed=(x_g.size * it_in + w_g.size * it_w + b_g.size * it_w
                        + rows * lane_out * it_out),
    )

    out_g = pl.pallas_call(
        _token_embed_kernel,
        out_shape=jax.ShapeDtypeStruct((rows, lane_out), out_dtype),
        grid_spec=pltpu.PrefetchScalarGridSpec(
            num_scalar_prefetch=0,
            grid=(grid_i, grid_j),
            in_specs=[x_spec, w_spec, b_spec],
            out_specs=o_spec,
        ),
        compiler_params=pltpu.CompilerParams(
            dimension_semantics=("parallel", "parallel"),
            vmem_limit_bytes=vmem_limit_bytes,           # <= 48 MiB: v7x-safe
        ),
        cost_estimate=cost,
    )(x_g, w_g, b_g)

    # Each grouped row holds `group` consecutive batch rows, each contributing
    # num_tokens*d_model contiguous outputs -> pure reshape, no copy.
    return out_g.reshape(batch, num_tokens, d_model)


def feature_tokenizer(x, weight, bias, *, token_dim, d_model, out_dtype=None):
    """One-shot convenience wrapper (matches the nn.Module forward).
    In real use, hoist pick_group / prepare_feature_tokenizer to init time."""
    batch, input_dim = x.shape
    num_tokens = -(-input_dim // token_dim)
    group = pick_group(batch, num_tokens, d_model, input_dim=input_dim,
                       itemsize=jnp.dtype(weight.dtype).itemsize)
    w_g, b_g = prepare_feature_tokenizer(weight, bias, input_dim=input_dim,
                                         token_dim=token_dim, d_model=d_model,
                                         group=group)
    return feature_tokenizer_apply(x, w_g, b_g, num_tokens=num_tokens,
                                   d_model=d_model, group=group,
                                   out_dtype=out_dtype)


if __name__ == "__main__":
    # Module hyperparameters (small, consistent with the forward pass).
    input_dim = 20    # not a multiple of token_dim -> exercises the folded-padding path
    token_dim = 8
    d_model = 32
    batch = 8         # divisible by the picked group (4) -> zero-copy grouping path

    num_tokens = (input_dim + token_dim - 1) // token_dim   # = 3

    key = jax.random.PRNGKey(0)
    kx, kw, kb = jax.random.split(key, 3)

    # Deterministic parameter init (mimic nn.Linear uniform(-1/sqrt(in), 1/sqrt(in))).
    bound = 1.0 / (token_dim ** 0.5)
    weight = jax.random.uniform(kw, (token_dim, d_model), jnp.float32, -bound, bound)
    bias = jax.random.uniform(kb, (d_model,), jnp.float32, -bound, bound)
    x = jax.random.normal(kx, (batch, input_dim), dtype=jnp.float32)

    # ---- init time (hoisted out of the per-forward path) ----
    group = pick_group(batch, num_tokens, d_model, input_dim=input_dim)
    w_g, b_g = prepare_feature_tokenizer(
        weight, bias, input_dim=input_dim, token_dim=token_dim,
        d_model=d_model, group=group)

    # ---- forward ----
    out = feature_tokenizer_apply(x, w_g, b_g, num_tokens=num_tokens,
                                  d_model=d_model, group=group)
    out = jax.block_until_ready(out)

    # Reference in plain JAX (same math as the PyTorch forward).
    x_pad = jnp.concatenate(
        [x, jnp.zeros((batch, num_tokens * token_dim - input_dim), x.dtype)], axis=1)
    ref = x_pad.reshape(batch, num_tokens, token_dim) @ weight + bias

    assert out.shape == (batch, num_tokens, d_model)
    assert jnp.allclose(out, ref, atol=1e-5, rtol=1e-5)

    print("KERNEL_OK")
</pallas_src>

<mosaic_0001>
module attributes {stable_mosaic.version = 11 : i64} {
  func.func @_token_embed_kernel(%arg0: i32, %arg1: i32, %arg2: memref<2x80xf32, #tpu.memory_space<vmem>>, %arg3: memref<80x384xf32, #tpu.memory_space<vmem>>, %arg4: memref<1x384xf32, #tpu.memory_space<vmem>>, %arg5: memref<2x384xf32, #tpu.memory_space<vmem>>) attributes {dimension_semantics = [#tpu.dimension_semantics<parallel>, #tpu.dimension_semantics<parallel>], iteration_bounds = array<i64: 1, 1>, scalar_prefetch = 0 : i64, scratch_operands = 0 : i64, tpu.core_type = #tpu.core_type<tc>, window_params = [{transform_indices = @transform_0, window_bounds = array<i64: 2, 80>}, {pipeline_mode = #tpu.pipeline_mode<synchronous>, transform_indices = @transform_1, window_bounds = array<i64: 80, 384>}, {pipeline_mode = #tpu.pipeline_mode<synchronous>, transform_indices = @transform_2, window_bounds = array<i64: 1, 384>}, {transform_indices = @transform_3, window_bounds = array<i64: 2, 384>}]} {
    %c0 = arith.constant 0 : index
    %c0_0 = arith.constant 0 : index
    %0 = vector.load %arg2[%c0, %c0_0] : memref<2x80xf32, #tpu.memory_space<vmem>>, vector<2x80xf32>
    %c0_1 = arith.constant 0 : index
    %c0_2 = arith.constant 0 : index
    %1 = vector.load %arg3[%c0_1, %c0_2] : memref<80x384xf32, #tpu.memory_space<vmem>>, vector<80x384xf32>
    %cst = arith.constant dense<0.000000e+00> : vector<2x384xf32>
    %2 = tpu.matmul %0, %1, %cst {dimension_numbers = #tpu.dot_dimension_numbers<[1], [0], [0], [1], [0, 0, 1, 1], [], []>} : vector<2x80xf32>, vector<80x384xf32>, vector<2x384xf32> -> vector<2x384xf32>
    %c0_3 = arith.constant 0 : index
    %c0_4 = arith.constant 0 : index
    %3 = vector.load %arg4[%c0_3, %c0_4] : memref<1x384xf32, #tpu.memory_space<vmem>>, vector<1x384xf32>
    %4 = vector.broadcast %3 : vector<1x384xf32> to vector<2x384xf32>
    %5 = arith.addf %2, %4 : vector<2x384xf32>
    %c0_5 = arith.constant 0 : index
    %c0_6 = arith.constant 0 : index
    %6 = vector.load %arg5[%c0_5, %c0_6] : memref<2x384xf32, #tpu.memory_space<vmem>>, vector<2x384xf32>
    tpu.vector_store %arg5[%c0_5, %c0_6], %5 {strides = array<i32>} : memref<2x384xf32, #tpu.memory_space<vmem>>, vector<2x384xf32>,
    return
  }
  func.func @transform_0(%arg0: i32, %arg1: i32) -> (i32, i32) {
    %c0_i32 = arith.constant 0 : i32
    %c0_i32_0 = arith.constant 0 : i32
    return %arg0, %c0_i32 : i32, i32
  }
  func.func @transform_1(%arg0: i32, %arg1: i32) -> (i32, i32) {
    %c0_i32 = arith.constant 0 : i32
    %c0_i32_0 = arith.constant 0 : i32
    return %c0_i32, %arg1 : i32, i32
  }
  func.func @transform_2(%arg0: i32, %arg1: i32) -> (i32, i32) {
    %c0_i32 = arith.constant 0 : i32
    %c0_i32_0 = arith.constant 0 : i32
    return %c0_i32, %arg1 : i32, i32
  }
  func.func @transform_3(%arg0: i32, %arg1: i32) -> (i32, i32) {
    %c0_i32 = arith.constant 0 : i32
    return %arg0, %arg1 : i32, i32
  }
}

</mosaic_0001>

<bundles_post_ra>
// kernel: tpu_custom_call.1
= control target key start
LH: loop header
LB: loop body
LE: loop exit
PB: predicated region body
PF: predicated region fallthrough
CT: control target
= control target key end

     0   :  { %8 = vsyncpa [#allocation3], 0  ;;  %s503_s0 = inlined_call_operand.hbm [shape: f32[2,80], index: 0, kind: input, shape index: {}]   ;;  %s504_s1 = inlined_call_operand.hbm [shape: f32[80,384], index: 1, kind: input, shape index: {}]   ;;  %s505_s2 = inlined_call_operand.vmem [shape: f32[1,384], index: 2, kind: input, shape index: {}]   ;;  %s506_s3 = inlined_call_operand.hbm [shape: f32[2,384], index: 3, kind: output, shape index: {}]  }
   0x1   :  { %9 = vsyncpa [#allocation6], 0 }
   0x2   :  { %10 = vsyncpa [#allocation4], 0  ;;  %s423_s12 = smov [#allocation2]   ;;  %s424_s14 = smov [#allocation5]  }
   0x3   :  { %s17_s13 = sshll.u32 %s423_s12, 4  ;;  %s26_s15 = sshll.u32 %s424_s14, 4  ;;  %s18_s13 = int_to_ptr.vmem [resolvable:$true] %s17_s13  ;;  %s452_s15 = int_to_ptr.vmem [resolvable:$true] %s26_s15 }
   0x4   :  { %s351_s18 = scalar_lea.hbm %s503_s0, 32 }
   0x5   :  { %p352_p0 = scmp.ne.s32.totalorder %s503_s0, %s351_s18  ;;  %p355_p1 = scmp.lt.u32.totalorder %s351_s18, %s503_s0 }
   0x7   :  { %p357_p2 = pnand %p355_p1, %p352_p0 }
   0x9   :  { %360 = shalt.err (!%p357_p2)
}
   0xa   :  { %s361_s23 = scalar_lea.vmem %s18_s13, 32  ;;  %p366_p4 = scmp.lt.s32.totalorder %s18_s13, %s18_s13 }
   0xb   :  { %p362_p3 = scmp.ne.s32.totalorder %s18_s13, %s361_s23  ;;  %p367_p5 = scmp.lt.s32.totalorder %s361_s23, %s361_s23 }
   0xd   :  { %p368_p6 = por %p367_p5, %p366_p4 }
   0xf   :  { %p369_p7 = pnand %p368_p6, %p362_p3 }
  0x11   :  { %372 = shalt.err (!%p369_p7)
}
  0x12   :  { %20 = dma.hbm_to_vmem [thread:$0]  %s503_s0, 32, %s18_s13, [#allocation3]  }
  0x13   :  { %s373_s28 = scalar_lea.hbm %s504_s1, 3840 }
  0x14   :  { %p374_p8 = scmp.ne.s32.totalorder %s504_s1, %s373_s28  ;;  %p377_p9 = scmp.lt.u32.totalorder %s373_s28, %s504_s1 }
  0x16   :  { %p379_p10 = pnand %p377_p9, %p374_p8 }
  0x18   :  { %382 = shalt.err (!%p379_p10)
}
  0x19   :  { %s383_s6 = scalar_lea.vmem %s452_s15, 3840  ;;  %p388_p12 = scmp.lt.s32.totalorder %s452_s15, %s452_s15 }
  0x1a   :  { %p384_p11 = scmp.ne.s32.totalorder %s452_s15, %s383_s6  ;;  %p389_p13 = scmp.lt.s32.totalorder %s383_s6, %s383_s6 }
  0x1c   :  { %p390_p0 = por %p389_p13, %p388_p12 }
  0x1e   :  { %p391_p1 = pnand %p390_p0, %p384_p11 }
  0x20   :  { %394 = shalt.err (!%p391_p1)
}
  0x21   :  { %s425_s0 = smov 384   ;;  %s426_s7 = smov 24  }
  0x22   :  { %32 = dma.hbm_to_vmem [thread:$0]  %s504_s1, 3840, %s452_s15, [#allocation6], %s425_s0, %s425_s0, %s426_s7  }
  0x23   :  { %417 = dma.done.wait [#allocation3], 32  }
  0x24   :  { %418 = vsyncadd [#allocation3], 4294967264 }
  0x25   :  { %419 = dma.done.wait [#allocation6], 3840  }
  0x26   :  { %420 = vsyncadd [#allocation6], 4294963456  ;;  %v427_v0 = vmov 0.0|0.0   ;;  %v428_v1 = vmov 0.0   ;;  %vm429_vm0 = vmmov 0   ;;  %v43_v2 = vld [vmem:[#allocation5 + $0x8] sm:$0xff]  ;;  %v74_v48 = vlaneseq }
  0x27   :  { %327 = vmatprep.subr.bf16.mxu1 %v427_v0  ;;  %157 = vmatprep.mubr.f32.mxu0 %v428_v1  ;;  %v46_v3 = vld [vmem:[#allocation5 + $0x20] sm:$0xff]  ;;  %v45_v6 = vld [vmem:[#allocation5 + $0x18] sm:$0xff]  ;;  %v44_v7 = vld [vmem:[#allocation5 + $0x10] sm:$0xff]  ;;  %vm89_vm1 = vcmask 654336   ;;  %v430_v50 = vmov 1983009808  }
  0x28   :  { %304 = vmatprep.mubr.msk.f32.mxu1 %vm429_vm0, %v428_v1  ;;  %v42_v4 = vld [vmem:[#allocation5] sm:$0xff]  ;;  %v307_v5 = vpack.c.bf16 %v46_v3, %v43_v2  ;;  %v47_v8 = vld [vmem:[#allocation5 + $0x28] sm:$0xff]  ;;  %v49_v11 = vld [vmem:[#allocation5 + $0x38] sm:$0xff]  ;;  %v75_v49 = vshrl.u32 %v74_v48, 7  ;;  %v239_v51 = vunpack.c.l.s4 %v430_v50  ;;  %s431_s11 = smov [#allocation7]  }
  0x29   :  { %v309_v9 = vpack.c.bf16 %v45_v6, %v42_v4  ;;  %v328_v10 = vpack.c.bf16 %v47_v8, %v44_v7  ;;  %v52_v12 = vld [vmem:[#allocation5 + $0x50] sm:$0xff]  ;;  %v51_v15 = vld [vmem:[#allocation5 + $0x48] sm:$0xff]  ;;  %v50_v16 = vld [vmem:[#allocation5 + $0x40] sm:$0xff]  ;;  %s261_s12 = sshll.u32 %s431_s11, 4  ;;  %s262_s12 = int_to_ptr.vmem [resolvable:$true] %s261_s12 }
  0x2a   :  { %v48_v13 = vld [vmem:[#allocation5 + $0x30] sm:$0xff]  ;;  %308 = vmatprep.subr.bf16.mxu0 %v307_v5  ;;  %v311_v14 = vpack.c.bf16 %v52_v12, %v49_v11  ;;  %v53_v17 = vld [vmem:[#allocation5 + $0x58] sm:$0xff]  ;;  %v55_v20 = vld [vmem:[#allocation5 + $0x68] sm:$0xff]  ;;  %v76_v52 = vsub.s32 0, %v75_v49  ;;  %v84_v53 = vsub.s32 2, %v75_v49  ;;  %v80_v55 = vsub.s32 1, %v75_v49  ;;  %p400_p3 = scmp.lt.s32.totalorder %s262_s12, %s262_s12 }
  0x2b   :  { %310 = vmatpush1.bf16.msra.mxu0 %v309_v9  ;;  %329 = vmatpush3.bf16.msra.mxu1 %v328_v10  ;;  %v313_v18 = vpack.c.bf16 %v51_v15, %v48_v13  ;;  %v331_v19 = vpack.c.bf16 %v53_v17, %v50_v16  ;;  %v58_v21 = vld [vmem:[#allocation5 + $0x80] sm:$0xff]  ;;  %v57_v24 = vld [vmem:[#allocation5 + $0x78] sm:$0xff]  ;;  %v56_v25 = vld [vmem:[#allocation5 + $0x70] sm:$0xff]  ;;  %v240_v56 = vunpack.c.0.s8 %v239_v51 }
  0x2c   :  { %v54_v22 = vld [vmem:[#allocation5 + $0x60] sm:$0xff]  ;;  %312 = vmatprep.subr.bf16.mxu0 %v311_v14  ;;  %330 = vmatprep.subr.bf16.mxu1 %v427_v0  ;;  %v315_v23 = vpack.c.bf16 %v58_v21, %v55_v20  ;;  %v59_v26 = vld [vmem:[#allocation5 + $0x88] sm:$0xff]  ;;  %v61_v27 = vld [vmem:[#allocation5 + $0x98] sm:$0xff] }
  0x2d   :  { %v64_v28 = vld [vmem:[#allocation5 + $0xb0] sm:$0xff]  ;;  %v317_v29 = vpack.c.bf16 %v57_v24, %v54_v22  ;;  %v334_v30 = vpack.c.bf16 %v59_v26, %v56_v25  ;;  %v63_v33 = vld [vmem:[#allocation5 + $0xa8] sm:$0xff]  ;;  %v62_v34 = vld [vmem:[#allocation5 + $0xa0] sm:$0xff]  ;;  %v243_v61 = vsub.s32 %v240_v56, %v75_v49 }
  0x2e   :  { %v60_v31 = vld [vmem:[#allocation5 + $0x90] sm:$0xff]  ;;  %v319_v32 = vpack.c.bf16 %v64_v28, %v61_v27  ;;  %v65_v35 = vld [vmem:[#allocation5 + $0xb8] sm:$0xff]  ;;  %v67_v36 = vld [vmem:[#allocation5 + $0xc8] sm:$0xff] }
  0x2f   :  { %314 = vmatpush1.bf16.msra.mxu0 %v313_v18  ;;  %332 = vmatpush3.bf16.msra.mxu1 %v331_v19  ;;  %v70_v37 = vld [vmem:[#allocation5 + $0xe0] sm:$0xff]  ;;  %v321_v38 = vpack.c.bf16 %v63_v33, %v60_v31  ;;  %v337_v39 = vpack.c.bf16 %v65_v35, %v62_v34  ;;  %v69_v42 = vld [vmem:[#allocation5 + $0xd8] sm:$0xff]  ;;  %v68_v43 = vld [vmem:[#allocation5 + $0xd0] sm:$0xff] }
  0x30   :  { %316 = vmatprep.subr.bf16.mxu0 %v315_v23  ;;  %333 = vmatprep.subr.bf16.mxu1 %v427_v0  ;;  %v66_v40 = vld [vmem:[#allocation5 + $0xc0] sm:$0xff]  ;;  %v323_v41 = vpack.c.bf16 %v70_v37, %v67_v36  ;;  %v71_v44 = vld [vmem:[#allocation5 + $0xe8] sm:$0xff]  ;;  %v41_v47 = vld [vmem:[#allocation2] sm:$0x3] }
  0x31   :  { %v325_v45 = vpack.c.bf16 %v69_v42, %v66_v40  ;;  %v340_v46 = vpack.c.bf16 %v71_v44, %v68_v43  ;;  %v72_v54 = vld [vmem:[%s505_s2] sm:$0x7]  ;;  %s395_s2 = scalar_lea.vmem %s262_s12, 96 }
  0x32   :  { %v77_v57 = vrot.slane %v72_v54, %v76_v52  ;;  %v85_v58 = vrot.slane %v72_v54, %v84_v53  ;;  %v81_v59 = vrot.slane %v72_v54, %v80_v55  ;;  %p396_p2 = scmp.ne.s32.totalorder %s262_s12, %s395_s2  ;;  %p401_p4 = scmp.lt.s32.totalorder %s395_s2, %s395_s2 }
  0x33   :  { %318 = vmatpush1.bf16.msra.mxu0 %v317_v29  ;;  %335 = vmatpush3.bf16.msra.mxu1 %v334_v30 }
  0x34   :  { %320 = vmatprep.subr.bf16.mxu0 %v319_v32  ;;  %336 = vmatprep.subr.bf16.mxu1 %v427_v0  ;;  %p402_p5 = por %p401_p4, %p400_p3 }
  0x36   :  { %p403_p6 = pnand %p402_p5, %p396_p2 }
  0x37   :  { %322 = vmatpush1.bf16.msra.mxu0 %v321_v38  ;;  %338 = vmatpush3.bf16.msra.mxu1 %v337_v39 }
  0x38   :  { %324 = vmatprep.subr.bf16.mxu0 %v323_v41  ;;  %339 = vmatprep.subr.bf16.mxu1 %v427_v0 }
  0x3b   :  { %326 = vmatpush1.bf16.msra.mxu0 %v325_v45  ;;  %341 = vmatpush3.bf16.msra.mxu1 %v340_v46 }
  0x3e   :  { %271 = vmatmul.mubr.msk.f32.vlgmr.msra.gmra.mrb[0].mxu0 %vm89_vm1, %v41_v47  ;;  %305 = vmatmul.mubr.msk.f32.vlgmr.msra.gmra.mrb[0].mxu1 %vm89_vm1, %v41_v47 }
 0x111   :  { %v159_v60 = vpop.f32.mrb[0].mxu0  ;;  %v230_v62 = vpop.f32.mrb[0].mxu1 }
 0x112   :  { %v160_v63 = vadd.f32 %v159_v60, %v77_v57  ;;  %v161_v0 = vpop.f32.mrb[1].mxu0  ;;  %v231_v1 = vadd.f32 %v230_v62, %v85_v58  ;;  %v306_v2 = vpop.f32.mrb[1].mxu1 }
 0x113   :  { %v162_v3 = vadd.f32 %v161_v0, %v81_v59 }
 0x114   :  { %v251_v5 = vrot.slane %v231_v1, %v243_v61 }
 0x115   :  { %v237_v4 = vcombine.low %v160_v63, %v162_v3 }
 0x117   :  { %v244_v6 = vrot.slane %v237_v4, %v243_v61 }
 0x119   :  { %v252_v7 = vcombine.low %v244_v6, %v251_v5 }
 0x11b   :  { %254 = vst [vmem:[#allocation7] sm:$0x3f] %v252_v7 }
 0x11c   :  { %406 = shalt.err (!%p403_p6)
}
 0x11d   :  { %s407_s15 = scalar_lea.hbm %s506_s3, 96 }
 0x11e   :  { %p408_p7 = scmp.ne.s32.totalorder %s506_s3, %s407_s15  ;;  %p411_p8 = scmp.lt.u32.totalorder %s407_s15, %s506_s3 }
 0x120   :  { %p413_p9 = pnand %p411_p8, %p408_p7 }
 0x122   :  { %416 = shalt.err (!%p413_p9)
}
 0x123   :  { %264 = dma.vmem_to_hbm [thread:$0]  %s262_s12, 96, %s506_s3, [#allocation4]  }
 0x124   :  { %421 = dma.done.wait [#allocation4], 96  }
 0x125   :  { %422 = vsyncadd [#allocation4], 4294967200 }
 0x126   :  { %268 = vsyncpa [#allocation3], 1 }
 0x127   :  { %269 = vsyncpa [#allocation6], 1 }
 0x128   :  { %270 = vsyncpa [#allocation4], 1 }

</bundles_post_ra>
